<compile_context>
chip_gen: v5e
topology: v5e:2x2
jax: 0.10.0
libtpu: 0.0.40
codegen_flags: <defaults>
</compile_context>

<pallas_src>
import jax
import jax.numpy as jnp
from jax.experimental import pallas as pl
from jax.experimental.pallas import tpu as pltpu

# Problem sizes (small, consistent with CLRS dummy trajectories).
B = 2          # batch
N = 8          # number of graph nodes
F_NODE = 4     # raw node-input feature dim
F_GRAPH = 4    # raw graph-input feature dim
H = 32         # hidden_dim (BaselineModel default 32)
O_OUT = 4      # output-decoder dim
O_HINT = 4     # hint-decoder dim
O_TOTAL = O_OUT + O_HINT
NB_STEPS = 4   # message-passing steps folded into one kernel invocation

LANES = 128    # lane-dense packed width
_BIG = 1e9

# ---- packed activation slab (B*N, 128): one DMA for x, g and adj -----------
_A_X = 0                        # lanes 0..3   : node inputs x
_A_G = F_NODE                   # lanes 4..7   : graph inputs g (broadcast per node)
_A_ADJ = 8                      # lanes 8..15  : adjacency row adj[b, j, :]

# ---- packed weight slab (144, 128): one DMA for every parameter ------------
# All row-block starts are sublane(8)-aligned.
_R_ENC = 0                      # rows 0..7   : block-diag [w_enc->lanes 0:H ; mg->lanes H:2H]
_R_SMALL = 8                    # rows 8..15  : row 8 b_enc, row 9 w_e, row 10 b_dec
_R_WZ = 16                      # rows 16..79 : [m1 | m2 | o1 | w_dec[:2H]]  (2H rows)
_R_O2 = _R_WZ + 2 * H           # rows 80..111: o2               (H rows, lanes 0:H)
_R_DECB = _R_O2 + H             # rows 112..143: w_dec[2H:3H]    (H rows, lanes 0:O_TOTAL)
_W_ROWS = _R_DECB + H           # 144


def _mpnn_kernel(act_ref, w_ref, out_ref, z_sc, gmsg_sc):
  """One grid step = one MPNN step; state carried in VMEM scratch across steps."""
  step = pl.program_id(0)
  act = act_ref[...]                                      # (B*N, 128)
  sm = w_ref[_R_SMALL:_R_SMALL + 8, :]                    # (8, 128) small vectors
  b_enc = sm[0:1, 0:H]                                    # (1, H)
  w_e = sm[1:2, 0:H].reshape(1, 1, H)                     # (1, 1, H)
  b_dec = sm[2:3, 0:O_TOTAL]                              # (1, O_TOTAL)

  @pl.when(step == 0)
  def _init():
    # Fused encoder: [x | g] @ blockdiag(w_enc, mg) -> [x_enc | m_g(g)].
    xg = act[:, _A_X:_A_X + F_NODE + F_GRAPH]             # (B*N, 8)
    enc = jnp.dot(xg, w_ref[_R_ENC:_R_ENC + 8, :],
                  preferred_element_type=jnp.float32)     # (B*N, 128)
    x_enc = enc[:, 0:H] + b_enc
    z_sc[...] = jnp.concatenate(
        [x_enc, jnp.zeros((B * N, H), jnp.float32)], axis=-1)   # hidden_0 = 0
    gmsg_sc[...] = enc[:, H:2 * H]                        # m_g(g), per node

  # z = [x_enc | hidden]; one fused MXU pass: [m1(z) | m2(z) | o1(z) | dec_top(z)].
  z = z_sc[...]                                           # (B*N, 2H)
  zw = jnp.dot(z, w_ref[_R_WZ:_R_WZ + 2 * H, :],
               preferred_element_type=jnp.float32)        # (B*N, 128)
  msg1 = (zw[:, 0:H] + gmsg_sc[...]).reshape(B, N, H)     # receiver term + graph term
  msg2 = zw[:, H:2 * H].reshape(B, N, H)                  # sender term
  o1z = zw[:, 2 * H:3 * H]                                # (B*N, H)
  dec_top = zw[:, 3 * H:3 * H + O_TOTAL]                  # (B*N, O_TOTAL)

  adj = act[:, _A_ADJ:_A_ADJ + N].reshape(B, N, N)        # adj[b, j, i], 0/1 mask

  # Running masked max over senders j: only one (B, N, H) slab live at a time.
  # max(relu(pre) * adj) == reference -1e9 masked max because relu >= 0, adj is
  # 0/1 and self-loops guarantee at least one valid sender per receiver.
  agg = jnp.zeros((B, N, H), jnp.float32)
  for j in range(N):
    aj = adj[:, j, :][:, :, None]                         # (B, N_i, 1)
    pre = msg1 + msg2[:, j:j + 1, :] + aj * w_e
    agg = jnp.maximum(agg, jax.nn.relu(pre) * aj)
  agg = agg.reshape(B * N, H)

  # h' = relu(o1(z) + o2(agg)); RHS is a full 128-lane row block, slice result.
  aw = jnp.dot(agg, w_ref[_R_O2:_R_O2 + H, :],
               preferred_element_type=jnp.float32)        # (B*N, 128)
  h_new = jax.nn.relu(o1z + aw[:, 0:H])

  # Carry hidden for the next step (full-lane store, no masked partial store).
  z_sc[...] = jnp.concatenate([z[:, 0:H], h_new], axis=-1)

  # Fused out|hint decoder on concat(x_enc, hidden, h_new), lane-dense store.
  # Written every step; constant output block index -> only the last step's
  # values are written back to HBM.
  dw = jnp.dot(h_new, w_ref[_R_DECB:_R_DECB + H, :],
               preferred_element_type=jnp.float32)        # (B*N, 128)
  dec = dec_top + dw[:, 0:O_TOTAL] + b_dec                # (B*N, O_TOTAL)
  out_ref[...] = jnp.concatenate(
      [dec, jnp.zeros((B * N, LANES - O_TOTAL), jnp.float32)], axis=-1)


def pack_params(params):
  """Wrapper-side weight packing into one (144, 128) slab (done once)."""
  (w_enc, b_enc, w_e, m1, m2, mg, o1, o2,
   w_out, b_out, w_hint, b_hint) = params
  w_dec = jnp.concatenate([w_out, w_hint], axis=1)        # (3H, O_TOTAL)
  b_dec = jnp.concatenate([b_out, b_hint], axis=1)        # (1, O_TOTAL)

  W = jnp.zeros((_W_ROWS, LANES), jnp.float32)
  W = W.at[_R_ENC:_R_ENC + F_NODE, 0:H].set(w_enc)
  W = W.at[_R_ENC + F_NODE:_R_ENC + F_NODE + F_GRAPH, H:2 * H].set(mg)
  W = W.at[_R_SMALL + 0, 0:H].set(b_enc[0])
  W = W.at[_R_SMALL + 1, 0:H].set(w_e[0])
  W = W.at[_R_SMALL + 2, 0:O_TOTAL].set(b_dec[0])
  wz = jnp.concatenate([m1, m2, o1, w_dec[:2 * H]], axis=1)    # (2H, 3H+8)
  W = W.at[_R_WZ:_R_WZ + 2 * H, 0:3 * H + O_TOTAL].set(wz)
  W = W.at[_R_O2:_R_O2 + H, 0:H].set(o2)
  W = W.at[_R_DECB:_R_DECB + H, 0:O_TOTAL].set(w_dec[2 * H:])
  return W


def pack_activations(x, adj, g):
  """One lane-dense activation slab. Precondition: adj is 0/1 with self-loops."""
  act = jnp.zeros((B * N, LANES), jnp.float32)
  act = act.at[:, _A_X:_A_X + F_NODE].set(x.reshape(B * N, F_NODE))
  act = act.at[:, _A_G:_A_G + F_GRAPH].set(jnp.repeat(g, N, axis=0))
  act = act.at[:, _A_ADJ:_A_ADJ + N].set(adj.reshape(B * N, N))
  return act


@jax.jit
def baseline_model_forward(act, wpack):
  """Returns (output_preds, hint_preds) like BaselineModel.forward."""
  fused = pl.pallas_call(
      _mpnn_kernel,
      out_shape=jax.ShapeDtypeStruct((B * N, LANES), jnp.float32),
      grid_spec=pltpu.PrefetchScalarGridSpec(
          num_scalar_prefetch=0,
          grid=(NB_STEPS,),
          in_specs=[
              pl.BlockSpec((B * N, LANES), lambda s: (0, 0)),     # activations
              pl.BlockSpec((_W_ROWS, LANES), lambda s: (0, 0)),   # all weights
          ],
          out_specs=pl.BlockSpec((B * N, LANES), lambda s: (0, 0)),
          scratch_shapes=[
              pltpu.VMEM((B * N, 2 * H), jnp.float32),   # [x_enc | hidden]
              pltpu.VMEM((B * N, H), jnp.float32),       # m_g(g) per node
          ],
      ),
      compiler_params=pltpu.CompilerParams(
          dimension_semantics=("arbitrary",)),           # step axis carries state
  )(act, wpack)
  fused = fused[:, :O_TOTAL].reshape(B, N, O_TOTAL)
  return fused[..., :O_OUT], fused[..., O_OUT:]


def reference_forward(x, adj, g, params, nb_steps=NB_STEPS):
  """Pure-JAX reference: nb_steps MPNN steps with hidden carried, decode each step."""
  (w_enc, b_enc, w_e, m1, m2, mg, o1, o2,
   w_out, b_out, w_hint, b_hint) = params
  x_enc = x @ w_enc + b_enc                                   # (B, N, H)
  msg_g = g @ mg                                              # (B, H)
  hidden = jnp.zeros((B, N, H), jnp.float32)
  out = hint = None
  for _ in range(nb_steps):
    z = jnp.concatenate([x_enc, hidden], axis=-1)             # (B, N, 2H)
    msg_1 = z @ m1
    msg_2 = z @ m2
    msg_e = adj[..., None] * w_e[0]                           # (B, N, N, H)
    msgs = jax.nn.relu(msg_1[:, None, :, :] + msg_2[:, :, None, :]
                       + msg_e + msg_g[:, None, None, :])
    masked = jnp.where(adj[..., None] > 0.0, msgs, -_BIG)
    agg = jnp.max(masked, axis=1)                             # (B, N, H)
    h_new = jax.nn.relu(z @ o1 + agg @ o2)
    dec_in = jnp.concatenate([z, h_new], axis=-1)
    out = dec_in @ w_out + b_out
    hint = dec_in @ w_hint + b_hint
    hidden = h_new
  return out, hint


def make_params(key):
  keys = jax.random.split(key, 12)
  s = 0.1
  w_enc = s * jax.random.normal(keys[0], (F_NODE, H), jnp.float32)
  b_enc = s * jax.random.normal(keys[1], (1, H), jnp.float32)
  w_e = s * jax.random.normal(keys[2], (1, H), jnp.float32)
  m1 = s * jax.random.normal(keys[3], (2 * H, H), jnp.float32)
  m2 = s * jax.random.normal(keys[4], (2 * H, H), jnp.float32)
  mg = s * jax.random.normal(keys[5], (F_GRAPH, H), jnp.float32)
  o1 = s * jax.random.normal(keys[6], (2 * H, H), jnp.float32)
  o2 = s * jax.random.normal(keys[7], (H, H), jnp.float32)
  w_out = s * jax.random.normal(keys[8], (3 * H, O_OUT), jnp.float32)
  b_out = s * jax.random.normal(keys[9], (1, O_OUT), jnp.float32)
  w_hint = s * jax.random.normal(keys[10], (3 * H, O_HINT), jnp.float32)
  b_hint = s * jax.random.normal(keys[11], (1, O_HINT), jnp.float32)
  return (w_enc, b_enc, w_e, m1, m2, mg, o1, o2,
          w_out, b_out, w_hint, b_hint)


if __name__ == "__main__":
  key = jax.random.PRNGKey(0)
  k_x, k_adj, k_g, k_p = jax.random.split(key, 4)

  x = jax.random.normal(k_x, (B, N, F_NODE), jnp.float32)
  adj = (jax.random.uniform(k_adj, (B, N, N)) > 0.5).astype(jnp.float32)
  # Self-loops: every node has at least one incoming message (precondition of
  # the masked-max-via-multiply shortcut; same precondition as the -1e9 path).
  adj = jnp.maximum(adj, jnp.eye(N, dtype=jnp.float32)[None])
  assert bool(jnp.all(jnp.diagonal(adj, axis1=1, axis2=2) == 1.0))
  g = jax.random.normal(k_g, (B, F_GRAPH), jnp.float32)
  params = make_params(k_p)

  wpack = pack_params(params)
  act = pack_activations(x, adj, g)

  out_preds, hint_preds = baseline_model_forward(act, wpack)
  out_preds = jax.block_until_ready(out_preds)
  hint_preds = jax.block_until_ready(hint_preds)

  ref_out, ref_hint = reference_forward(x, adj, g, params)
  assert jnp.allclose(out_preds, ref_out, atol=1e-3, rtol=1e-3), (
      float(jnp.max(jnp.abs(out_preds - ref_out))))
  assert jnp.allclose(hint_preds, ref_hint, atol=1e-3, rtol=1e-3), (
      float(jnp.max(jnp.abs(hint_preds - ref_hint))))

  # TODO(synk): LSTM gating, hint teacher-forcing and per-time-step hint
  # stacking of nets.Net remain orchestration-level control flow in JAX.
  print("KERNEL_OK")
</pallas_src>

<mosaic_0001>
module attributes {stable_mosaic.version = 11 : i64} {
  func.func @_mpnn_kernel(%arg0: i32, %arg1: memref<16x128xf32, #tpu.memory_space<vmem>>, %arg2: memref<144x128xf32, #tpu.memory_space<vmem>>, %arg3: memref<16x128xf32, #tpu.memory_space<vmem>>, %arg4: memref<16x64xf32, #tpu.memory_space<vmem>>, %arg5: memref<16x32xf32, #tpu.memory_space<vmem>>) attributes {dimension_semantics = [#tpu.dimension_semantics<arbitrary>], iteration_bounds = array<i64: 4>, scalar_prefetch = 0 : i64, scratch_operands = 2 : i64, tpu.core_type = #tpu.core_type<tc>, window_params = [{pipeline_mode = #tpu.pipeline_mode<synchronous>, transform_indices = @transform_0, window_bounds = array<i64: 16, 128>}, {pipeline_mode = #tpu.pipeline_mode<synchronous>, transform_indices = @transform_1, window_bounds = array<i64: 144, 128>}, {pipeline_mode = #tpu.pipeline_mode<synchronous>, transform_indices = @transform_2, window_bounds = array<i64: 16, 128>}]} {
    %c0 = arith.constant 0 : index
    %c0_0 = arith.constant 0 : index
    %0 = vector.load %arg1[%c0, %c0_0] : memref<16x128xf32, #tpu.memory_space<vmem>>, vector<16x128xf32>
    %c8 = arith.constant 8 : index
    %c0_1 = arith.constant 0 : index
    %1 = vector.load %arg2[%c8, %c0_1] : memref<144x128xf32, #tpu.memory_space<vmem>>, vector<8x128xf32>
    %2 = vector.extract_strided_slice %1 {offsets = [0, 0], sizes = [1, 32], strides = [1, 1]} : vector<8x128xf32> to vector<1x32xf32>
    %3 = vector.extract_strided_slice %1 {offsets = [1, 0], sizes = [1, 32], strides = [1, 1]} : vector<8x128xf32> to vector<1x32xf32>
    %4 = vector.shape_cast %3 : vector<1x32xf32> to vector<1x1x32xf32>
    %5 = vector.extract_strided_slice %1 {offsets = [2, 0], sizes = [1, 8], strides = [1, 1]} : vector<8x128xf32> to vector<1x8xf32>
    %c0_i32 = arith.constant 0 : i32
    %6 = arith.cmpi eq, %arg0, %c0_i32 : i32
    %7 = arith.extui %6 : i1 to i32
    %c0_i32_2 = arith.constant 0 : i32
    %8 = arith.cmpi ne, %7, %c0_i32_2 : i32
    scf.if %8 {
      %162 = vector.extract_strided_slice %0 {offsets = [0, 0], sizes = [16, 8], strides = [1, 1]} : vector<16x128xf32> to vector<16x8xf32>
      %c0_27 = arith.constant 0 : index
      %c0_28 = arith.constant 0 : index
      %163 = vector.load %arg2[%c0_27, %c0_28] : memref<144x128xf32, #tpu.memory_space<vmem>>, vector<8x128xf32>
      %cst_29 = arith.constant dense<0.000000e+00> : vector<16x128xf32>
      %164 = tpu.matmul %162, %163, %cst_29 {dimension_numbers = #tpu.dot_dimension_numbers<[1], [0], [0], [1], [0, 0, 1, 1], [], []>} : vector<16x8xf32>, vector<8x128xf32>, vector<16x128xf32> -> vector<16x128xf32>
      %165 = vector.extract_strided_slice %164 {offsets = [0, 0], sizes = [16, 32], strides = [1, 1]} : vector<16x128xf32> to vector<16x32xf32>
      %166 = vector.broadcast %2 : vector<1x32xf32> to vector<16x32xf32>
      %167 = arith.addf %165, %166 : vector<16x32xf32>
      %cst_30 = arith.constant 0.000000e+00 : f32
      %168 = vector.broadcast %cst_30 : f32 to vector<16x32xf32>
      %169 = tpu.concatenate %167, %168 in 1 : vector<16x32xf32>, vector<16x32xf32> -> vector<16x64xf32>
      %c0_31 = arith.constant 0 : index
      %c0_32 = arith.constant 0 : index
      %170 = vector.load %arg4[%c0_31, %c0_32] : memref<16x64xf32, #tpu.memory_space<vmem>>, vector<16x64xf32>
      tpu.vector_store %arg4[%c0_31, %c0_32], %169 {strides = array<i32>} : memref<16x64xf32, #tpu.memory_space<vmem>>, vector<16x64xf32>,
      %171 = vector.extract_strided_slice %164 {offsets = [0, 32], sizes = [16, 32], strides = [1, 1]} : vector<16x128xf32> to vector<16x32xf32>
      %c0_33 = arith.constant 0 : index
      %c0_34 = arith.constant 0 : index
      %172 = vector.load %arg5[%c0_33, %c0_34] : memref<16x32xf32, #tpu.memory_space<vmem>>, vector<16x32xf32>
      tpu.vector_store %arg5[%c0_33, %c0_34], %171 {strides = array<i32>} : memref<16x32xf32, #tpu.memory_space<vmem>>, vector<16x32xf32>,
    } else {
    }
    %c0_3 = arith.constant 0 : index
    %c0_4 = arith.constant 0 : index
    %9 = vector.load %arg4[%c0_3, %c0_4] : memref<16x64xf32, #tpu.memory_space<vmem>>, vector<16x64xf32>
    %c16 = arith.constant 16 : index
    %c0_5 = arith.constant 0 : index
    %10 = vector.load %arg2[%c16, %c0_5] : memref<144x128xf32, #tpu.memory_space<vmem>>, vector<64x128xf32>
    %cst = arith.constant dense<0.000000e+00> : vector<16x128xf32>
    %11 = tpu.matmul %9, %10, %cst {dimension_numbers = #tpu.dot_dimension_numbers<[1], [0], [0], [1], [0, 0, 1, 1], [], []>} : vector<16x64xf32>, vector<64x128xf32>, vector<16x128xf32> -> vector<16x128xf32>
    %12 = vector.extract_strided_slice %11 {offsets = [0, 0], sizes = [16, 32], strides = [1, 1]} : vector<16x128xf32> to vector<16x32xf32>
    %c0_6 = arith.constant 0 : index
    %c0_7 = arith.constant 0 : index
    %13 = vector.load %arg5[%c0_6, %c0_7] : memref<16x32xf32, #tpu.memory_space<vmem>>, vector<16x32xf32>
    %14 = arith.addf %12, %13 : vector<16x32xf32>
    %15 = vector.shape_cast %14 : vector<16x32xf32> to vector<2x8x32xf32>
    %16 = vector.extract_strided_slice %11 {offsets = [0, 32], sizes = [16, 32], strides = [1, 1]} : vector<16x128xf32> to vector<16x32xf32>
    %17 = vector.shape_cast %16 : vector<16x32xf32> to vector<2x8x32xf32>
    %18 = vector.extract_strided_slice %11 {offsets = [0, 64], sizes = [16, 32], strides = [1, 1]} : vector<16x128xf32> to vector<16x32xf32>
    %19 = vector.extract_strided_slice %11 {offsets = [0, 96], sizes = [16, 8], strides = [1, 1]} : vector<16x128xf32> to vector<16x8xf32>
    %20 = vector.extract_strided_slice %0 {offsets = [0, 8], sizes = [16, 8], strides = [1, 1]} : vector<16x128xf32> to vector<16x8xf32>
    %21 = vector.shape_cast %20 : vector<16x8xf32> to vector<2x8x8xf32>
    %cst_8 = arith.constant 0.000000e+00 : f32
    %22 = vector.broadcast %cst_8 : f32 to vector<2x8x32xf32>
    %23 = vector.extract_strided_slice %21 {offsets = [0, 0, 0], sizes = [2, 1, 8], strides = [1, 1, 1]} : vector<2x8x8xf32> to vector<2x1x8xf32>
    %24 = vector.shape_cast %23 : vector<2x1x8xf32> to vector<2x8xf32>
    %25 = vector.shape_cast %24 : vector<2x8xf32> to vector<2x8x1xf32>
    %26 = vector.extract_strided_slice %17 {offsets = [0, 0, 0], sizes = [2, 1, 32], strides = [1, 1, 1]} : vector<2x8x32xf32> to vector<2x1x32xf32>
    %27 = vector.broadcast %26 : vector<2x1x32xf32> to vector<2x8x32xf32>
    %28 = arith.addf %15, %27 : vector<2x8x32xf32>
    %29 = vector.broadcast %25 : vector<2x8x1xf32> to vector<2x8x32xf32>
    %30 = vector.broadcast %4 : vector<1x1x32xf32> to vector<2x8x32xf32>
    %31 = arith.mulf %29, %30 : vector<2x8x32xf32>
    %32 = arith.addf %28, %31 : vector<2x8x32xf32>
    %cst_9 = arith.constant 0.000000e+00 : f32
    %33 = vector.broadcast %cst_9 : f32 to vector<2x8x32xf32>
    %34 = arith.maximumf %32, %33 : vector<2x8x32xf32>
    %35 = vector.broadcast %25 : vector<2x8x1xf32> to vector<2x8x32xf32>
    %36 = arith.mulf %34, %35 : vector<2x8x32xf32>
    %37 = arith.maximumf %22, %36 : vector<2x8x32xf32>
    %38 = vector.extract_strided_slice %21 {offsets = [0, 1, 0], sizes = [2, 1, 8], strides = [1, 1, 1]} : vector<2x8x8xf32> to vector<2x1x8xf32>
    %39 = vector.shape_cast %38 : vector<2x1x8xf32> to vector<2x8xf32>
    %40 = vector.shape_cast %39 : vector<2x8xf32> to vector<2x8x1xf32>
    %41 = vector.extract_strided_slice %17 {offsets = [0, 1, 0], sizes = [2, 1, 32], strides = [1, 1, 1]} : vector<2x8x32xf32> to vector<2x1x32xf32>
    %42 = vector.broadcast %41 : vector<2x1x32xf32> to vector<2x8x32xf32>
    %43 = arith.addf %15, %42 : vector<2x8x32xf32>
    %44 = vector.broadcast %40 : vector<2x8x1xf32> to vector<2x8x32xf32>
    %45 = vector.broadcast %4 : vector<1x1x32xf32> to vector<2x8x32xf32>
    %46 = arith.mulf %44, %45 : vector<2x8x32xf32>
    %47 = arith.addf %43, %46 : vector<2x8x32xf32>
    %cst_10 = arith.constant 0.000000e+00 : f32
    %48 = vector.broadcast %cst_10 : f32 to vector<2x8x32xf32>
    %49 = arith.maximumf %47, %48 : vector<2x8x32xf32>
    %50 = vector.broadcast %40 : vector<2x8x1xf32> to vector<2x8x32xf32>
    %51 = arith.mulf %49, %50 : vector<2x8x32xf32>
    %52 = arith.maximumf %37, %51 : vector<2x8x32xf32>
    %53 = vector.extract_strided_slice %21 {offsets = [0, 2, 0], sizes = [2, 1, 8], strides = [1, 1, 1]} : vector<2x8x8xf32> to vector<2x1x8xf32>
    %54 = vector.shape_cast %53 : vector<2x1x8xf32> to vector<2x8xf32>
    %55 = vector.shape_cast %54 : vector<2x8xf32> to vector<2x8x1xf32>
    %56 = vector.extract_strided_slice %17 {offsets = [0, 2, 0], sizes = [2, 1, 32], strides = [1, 1, 1]} : vector<2x8x32xf32> to vector<2x1x32xf32>
    %57 = vector.broadcast %56 : vector<2x1x32xf32> to vector<2x8x32xf32>
    %58 = arith.addf %15, %57 : vector<2x8x32xf32>
    %59 = vector.broadcast %55 : vector<2x8x1xf32> to vector<2x8x32xf32>
    %60 = vector.broadcast %4 : vector<1x1x32xf32> to vector<2x8x32xf32>
    %61 = arith.mulf %59, %60 : vector<2x8x32xf32>
    %62 = arith.addf %58, %61 : vector<2x8x32xf32>
    %cst_11 = arith.constant 0.000000e+00 : f32
    %63 = vector.broadcast %cst_11 : f32 to vector<2x8x32xf32>
    %64 = arith.maximumf %62, %63 : vector<2x8x32xf32>
    %65 = vector.broadcast %55 : vector<2x8x1xf32> to vector<2x8x32xf32>
    %66 = arith.mulf %64, %65 : vector<2x8x32xf32>
    %67 = arith.maximumf %52, %66 : vector<2x8x32xf32>
    %68 = vector.extract_strided_slice %21 {offsets = [0, 3, 0], sizes = [2, 1, 8], strides = [1, 1, 1]} : vector<2x8x8xf32> to vector<2x1x8xf32>
    %69 = vector.shape_cast %68 : vector<2x1x8xf32> to vector<2x8xf32>
    %70 = vector.shape_cast %69 : vector<2x8xf32> to vector<2x8x1xf32>
    %71 = vector.extract_strided_slice %17 {offsets = [0, 3, 0], sizes = [2, 1, 32], strides = [1, 1, 1]} : vector<2x8x32xf32> to vector<2x1x32xf32>
    %72 = vector.broadcast %71 : vector<2x1x32xf32> to vector<2x8x32xf32>
    %73 = arith.addf %15, %72 : vector<2x8x32xf32>
    %74 = vector.broadcast %70 : vector<2x8x1xf32> to vector<2x8x32xf32>
    %75 = vector.broadcast %4 : vector<1x1x32xf32> to vector<2x8x32xf32>
    %76 = arith.mulf %74, %75 : vector<2x8x32xf32>
    %77 = arith.addf %73, %76 : vector<2x8x32xf32>
    %cst_12 = arith.constant 0.000000e+00 : f32
    %78 = vector.broadcast %cst_12 : f32 to vector<2x8x32xf32>
    %79 = arith.maximumf %77, %78 : vector<2x8x32xf32>
    %80 = vector.broadcast %70 : vector<2x8x1xf32> to vector<2x8x32xf32>
    %81 = arith.mulf %79, %80 : vector<2x8x32xf32>
    %82 = arith.maximumf %67, %81 : vector<2x8x32xf32>
    %83 = vector.extract_strided_slice %21 {offsets = [0, 4, 0], sizes = [2, 1, 8], strides = [1, 1, 1]} : vector<2x8x8xf32> to vector<2x1x8xf32>
    %84 = vector.shape_cast %83 : vector<2x1x8xf32> to vector<2x8xf32>
    %85 = vector.shape_cast %84 : vector<2x8xf32> to vector<2x8x1xf32>
    %86 = vector.extract_strided_slice %17 {offsets = [0, 4, 0], sizes = [2, 1, 32], strides = [1, 1, 1]} : vector<2x8x32xf32> to vector<2x1x32xf32>
    %87 = vector.broadcast %86 : vector<2x1x32xf32> to vector<2x8x32xf32>
    %88 = arith.addf %15, %87 : vector<2x8x32xf32>
    %89 = vector.broadcast %85 : vector<2x8x1xf32> to vector<2x8x32xf32>
    %90 = vector.broadcast %4 : vector<1x1x32xf32> to vector<2x8x32xf32>
    %91 = arith.mulf %89, %90 : vector<2x8x32xf32>
    %92 = arith.addf %88, %91 : vector<2x8x32xf32>
    %cst_13 = arith.constant 0.000000e+00 : f32
    %93 = vector.broadcast %cst_13 : f32 to vector<2x8x32xf32>
    %94 = arith.maximumf %92, %93 : vector<2x8x32xf32>
    %95 = vector.broadcast %85 : vector<2x8x1xf32> to vector<2x8x32xf32>
    %96 = arith.mulf %94, %95 : vector<2x8x32xf32>
    %97 = arith.maximumf %82, %96 : vector<2x8x32xf32>
    %98 = vector.extract_strided_slice %21 {offsets = [0, 5, 0], sizes = [2, 1, 8], strides = [1, 1, 1]} : vector<2x8x8xf32> to vector<2x1x8xf32>
    %99 = vector.shape_cast %98 : vector<2x1x8xf32> to vector<2x8xf32>
    %100 = vector.shape_cast %99 : vector<2x8xf32> to vector<2x8x1xf32>
    %101 = vector.extract_strided_slice %17 {offsets = [0, 5, 0], sizes = [2, 1, 32], strides = [1, 1, 1]} : vector<2x8x32xf32> to vector<2x1x32xf32>
    %102 = vector.broadcast %101 : vector<2x1x32xf32> to vector<2x8x32xf32>
    %103 = arith.addf %15, %102 : vector<2x8x32xf32>
    %104 = vector.broadcast %100 : vector<2x8x1xf32> to vector<2x8x32xf32>
    %105 = vector.broadcast %4 : vector<1x1x32xf32> to vector<2x8x32xf32>
    %106 = arith.mulf %104, %105 : vector<2x8x32xf32>
    %107 = arith.addf %103, %106 : vector<2x8x32xf32>
    %cst_14 = arith.constant 0.000000e+00 : f32
    %108 = vector.broadcast %cst_14 : f32 to vector<2x8x32xf32>
    %109 = arith.maximumf %107, %108 : vector<2x8x32xf32>
    %110 = vector.broadcast %100 : vector<2x8x1xf32> to vector<2x8x32xf32>
    %111 = arith.mulf %109, %110 : vector<2x8x32xf32>
    %112 = arith.maximumf %97, %111 : vector<2x8x32xf32>
    %113 = vector.extract_strided_slice %21 {offsets = [0, 6, 0], sizes = [2, 1, 8], strides = [1, 1, 1]} : vector<2x8x8xf32> to vector<2x1x8xf32>
    %114 = vector.shape_cast %113 : vector<2x1x8xf32> to vector<2x8xf32>
    %115 = vector.shape_cast %114 : vector<2x8xf32> to vector<2x8x1xf32>
    %116 = vector.extract_strided_slice %17 {offsets = [0, 6, 0], sizes = [2, 1, 32], strides = [1, 1, 1]} : vector<2x8x32xf32> to vector<2x1x32xf32>
    %117 = vector.broadcast %116 : vector<2x1x32xf32> to vector<2x8x32xf32>
    %118 = arith.addf %15, %117 : vector<2x8x32xf32>
    %119 = vector.broadcast %115 : vector<2x8x1xf32> to vector<2x8x32xf32>
    %120 = vector.broadcast %4 : vector<1x1x32xf32> to vector<2x8x32xf32>
    %121 = arith.mulf %119, %120 : vector<2x8x32xf32>
    %122 = arith.addf %118, %121 : vector<2x8x32xf32>
    %cst_15 = arith.constant 0.000000e+00 : f32
    %123 = vector.broadcast %cst_15 : f32 to vector<2x8x32xf32>
    %124 = arith.maximumf %122, %123 : vector<2x8x32xf32>
    %125 = vector.broadcast %115 : vector<2x8x1xf32> to vector<2x8x32xf32>
    %126 = arith.mulf %124, %125 : vector<2x8x32xf32>
    %127 = arith.maximumf %112, %126 : vector<2x8x32xf32>
    %128 = vector.extract_strided_slice %21 {offsets = [0, 7, 0], sizes = [2, 1, 8], strides = [1, 1, 1]} : vector<2x8x8xf32> to vector<2x1x8xf32>
    %129 = vector.shape_cast %128 : vector<2x1x8xf32> to vector<2x8xf32>
    %130 = vector.shape_cast %129 : vector<2x8xf32> to vector<2x8x1xf32>
    %131 = vector.extract_strided_slice %17 {offsets = [0, 7, 0], sizes = [2, 1, 32], strides = [1, 1, 1]} : vector<2x8x32xf32> to vector<2x1x32xf32>
    %132 = vector.broadcast %131 : vector<2x1x32xf32> to vector<2x8x32xf32>
    %133 = arith.addf %15, %132 : vector<2x8x32xf32>
    %134 = vector.broadcast %130 : vector<2x8x1xf32> to vector<2x8x32xf32>
    %135 = vector.broadcast %4 : vector<1x1x32xf32> to vector<2x8x32xf32>
    %136 = arith.mulf %134, %135 : vector<2x8x32xf32>
    %137 = arith.addf %133, %136 : vector<2x8x32xf32>
    %cst_16 = arith.constant 0.000000e+00 : f32
    %138 = vector.broadcast %cst_16 : f32 to vector<2x8x32xf32>
    %139 = arith.maximumf %137, %138 : vector<2x8x32xf32>
    %140 = vector.broadcast %130 : vector<2x8x1xf32> to vector<2x8x32xf32>
    %141 = arith.mulf %139, %140 : vector<2x8x32xf32>
    %142 = arith.maximumf %127, %141 : vector<2x8x32xf32>
    %143 = vector.shape_cast %142 : vector<2x8x32xf32> to vector<16x32xf32>
    %c80 = arith.constant 80 : index
    %c0_17 = arith.constant 0 : index
    %144 = vector.load %arg2[%c80, %c0_17] : memref<144x128xf32, #tpu.memory_space<vmem>>, vector<32x128xf32>
    %cst_18 = arith.constant dense<0.000000e+00> : vector<16x128xf32>
    %145 = tpu.matmul %143, %144, %cst_18 {dimension_numbers = #tpu.dot_dimension_numbers<[1], [0], [0], [1], [0, 0, 1, 1], [], []>} : vector<16x32xf32>, vector<32x128xf32>, vector<16x128xf32> -> vector<16x128xf32>
    %146 = vector.extract_strided_slice %145 {offsets = [0, 0], sizes = [16, 32], strides = [1, 1]} : vector<16x128xf32> to vector<16x32xf32>
    %147 = arith.addf %18, %146 : vector<16x32xf32>
    %cst_19 = arith.constant 0.000000e+00 : f32
    %148 = vector.broadcast %cst_19 : f32 to vector<16x32xf32>
    %149 = arith.maximumf %147, %148 : vector<16x32xf32>
    %150 = vector.extract_strided_slice %9 {offsets = [0, 0], sizes = [16, 32], strides = [1, 1]} : vector<16x64xf32> to vector<16x32xf32>
    %151 = tpu.concatenate %150, %149 in 1 : vector<16x32xf32>, vector<16x32xf32> -> vector<16x64xf32>
    %c0_20 = arith.constant 0 : index
    %c0_21 = arith.constant 0 : index
    %152 = vector.load %arg4[%c0_20, %c0_21] : memref<16x64xf32, #tpu.memory_space<vmem>>, vector<16x64xf32>
    tpu.vector_store %arg4[%c0_20, %c0_21], %151 {strides = array<i32>} : memref<16x64xf32, #tpu.memory_space<vmem>>, vector<16x64xf32>,
    %c112 = arith.constant 112 : index
    %c0_22 = arith.constant 0 : index
    %153 = vector.load %arg2[%c112, %c0_22] : memref<144x128xf32, #tpu.memory_space<vmem>>, vector<32x128xf32>
    %cst_23 = arith.constant dense<0.000000e+00> : vector<16x128xf32>
    %154 = tpu.matmul %149, %153, %cst_23 {dimension_numbers = #tpu.dot_dimension_numbers<[1], [0], [0], [1], [0, 0, 1, 1], [], []>} : vector<16x32xf32>, vector<32x128xf32>, vector<16x128xf32> -> vector<16x128xf32>
    %155 = vector.extract_strided_slice %154 {offsets = [0, 0], sizes = [16, 8], strides = [1, 1]} : vector<16x128xf32> to vector<16x8xf32>
    %156 = arith.addf %19, %155 : vector<16x8xf32>
    %157 = vector.broadcast %5 : vector<1x8xf32> to vector<16x8xf32>
    %158 = arith.addf %156, %157 : vector<16x8xf32>
    %cst_24 = arith.constant 0.000000e+00 : f32
    %159 = vector.broadcast %cst_24 : f32 to vector<16x120xf32>
    %160 = tpu.concatenate %158, %159 in 1 : vector<16x8xf32>, vector<16x120xf32> -> vector<16x128xf32>
    %c0_25 = arith.constant 0 : index
    %c0_26 = arith.constant 0 : index
    %161 = vector.load %arg3[%c0_25, %c0_26] : memref<16x128xf32, #tpu.memory_space<vmem>>, vector<16x128xf32>
    tpu.vector_store %arg3[%c0_25, %c0_26], %160 {strides = array<i32>} : memref<16x128xf32, #tpu.memory_space<vmem>>, vector<16x128xf32>,
    return
  }
  func.func @transform_0(%arg0: i32) -> (i32, i32) {
    %c0_i32 = arith.constant 0 : i32
    %c0_i32_0 = arith.constant 0 : i32
    %c0_i32_1 = arith.constant 0 : i32
    return %c0_i32, %c0_i32_0 : i32, i32
  }
  func.func @transform_1(%arg0: i32) -> (i32, i32) {
    %c0_i32 = arith.constant 0 : i32
    %c0_i32_0 = arith.constant 0 : i32
    %c0_i32_1 = arith.constant 0 : i32
    return %c0_i32, %c0_i32_0 : i32, i32
  }
  func.func @transform_2(%arg0: i32) -> (i32, i32) {
    %c0_i32 = arith.constant 0 : i32
    %c0_i32_0 = arith.constant 0 : i32
    %c0_i32_1 = arith.constant 0 : i32
    return %c0_i32, %c0_i32_0 : i32, i32
  }
}

</mosaic_0001>

<bundles_post_ra>
// kernel: baseline_model_forward.1
= control target key start
LH: loop header
LB: loop body
LE: loop exit
PB: predicated region body
PF: predicated region fallthrough
CT: control target
= control target key end

     0   :  { %7 = vsyncpa [#allocation5], 0  ;;  %s1073_s0 = inlined_call_operand.hbm [shape: f32[16,128], index: 0, kind: input, shape index: {}]   ;;  %s1074_s1 = inlined_call_operand.hbm [shape: f32[144,128], index: 1, kind: input, shape index: {}]   ;;  %s1075_s2 = inlined_call_operand.vmem [shape: f32[16,128], index: 2, kind: output, shape index: {}]  }
   0x1   :  { %8 = vsyncpa [#allocation7], 0  ;;  %s858_s9 = smov 0  }
   0x2 LB: > { %s93_s12 = sshll.u32 %s1073_s0, 4  ;;  %s694_s13 = sadd.s32 4294967295, %s833_s9   ;;  %s833_s9 = sphi %s858_s9, %s14_s9   ;;  %s94_s12 = int_to_ptr.hbm [resolvable:$true] %s93_s12 }
   0x3   : > { %p695_p0 = scmp.ge.s32.totalorder %s833_s9, 1  ;;  %p82_p1 = scmp.lt.s32.totalorder %s833_s9, 5 }
   0x4   : > { %p869_p2 = scmp.ne.s32.totalorder %s694_s13, 0  ;;  %p873_p3 = scmp.eq.s32.totalorder %s694_s13, 0 }
   0x5   : > { %p877_p4 = pnand %p695_p0, %p82_p1  ;;  %s835_s17 = smov [#allocation4]  }
   0x6   : > { %s95_s18 = sshll.u32 %s835_s17, 4  ;;  %s107_s21 = sshll.u32 %s1074_s1, 4  ;;  %s96_s18 = int_to_ptr.vmem [resolvable:$true] %s95_s18  ;;  %s108_s21 = int_to_ptr.hbm [resolvable:$true] %s107_s21 }
   0x7   : > { %p729_p5 = pneg %p877_p4  ;;  %s836_s22 = smov [#allocation6]  }
   0x8   : > { %s109_s23 = sshll.u32 %s836_s22, 4  ;;  %s837_s24 = smov 128   ;;  %s110_s23 = int_to_ptr.vmem [resolvable:$true] %s109_s23 }
   0x9   : > { %p730_p6 = pnand %p873_p3, %p729_p5  ;;  %s838_s25 = smov 8  }
   0xa   : > { %125 = sbr.rel (%p877_p4) target bundleno = 1289 (0x509), region = 28 }
   0xb   : > { %732 = dma.hbm_to_vmem [thread:$0]  (!%p730_p6), %s94_s12, 256, %s96_s18, [#allocation5], %s837_s24, %s837_s24, %s838_s25  }
   0xc   : > { %735 = dma.hbm_to_vmem [thread:$0]  (!%p730_p6), %s108_s21, 2304, %s110_s23, [#allocation7], %s837_s24, %s837_s24, %s838_s25  }
   0xf   : > { %824 = dma.done.wait (%p873_p3), [#allocation5], 256  }
  0x10   : > { %826 = vsyncadd (%p873_p3), [#allocation5], 4294967040 }
  0x11   : > { %828 = dma.done.wait (%p873_p3), [#allocation7], 2304  }
  0x12   : > { %830 = vsyncadd (%p873_p3), [#allocation7], 4294964992  ;;  %v898_v0 = vld [vmem:[#allocation4] sm:$0xff]  ;;  %v900_v1 = vld [vmem:[#allocation4 + $0x8] sm:$0xff]  ;;  %149 = sbr.rel (%p869_p2) target bundleno = 275 (0x113), region = 40  ;;  %s839_s26 = smov (!%p869_p2), 96  }
  0x13   : > { %v902_v2 = vld [vmem:[#allocation6 + $0x8] sm:$0xff] }
  0x17   : > { %v150_v3 = vld [vmem:[#allocation6] sm:$0xff]  ;;  %vm151_vm0 = vcmask 64512   ;;  %v181_v4 = vperm.slane %v902_v2, 0  ;;  %vm184_vm1 = vcmask 261120   ;;  %vm187_vm2 = vcmask 523264  }
  0x18   : > { %173 = vmatpush.msra.mxu0 %v150_v3  ;;  %712 = vmatpush.msra.mxu1 %v150_v3 }
  0x19   : > { %702 = vmatmul.msk.f32.vlgmr.msra.gmra.mxu0 %vm151_vm0, %v898_v0  ;;  %703 = vmatmul.msk.f32.vlgmr.msra.gmra.mxu1 %vm151_vm0, %v900_v1 }
  0x96   : > { %v175_v5 = vpop.f32.mrf.mxu0  ;;  %v178_v6 = vpop.f32.mrf.mxu1 }
  0x97   : > { %v182_v7 = vadd.f32 %v181_v4, %v175_v5  ;;  %192 = vrot.lane.b32.xlu0 %v175_v5, %s839_s26  ;;  %v183_v8 = vadd.f32 %v181_v4, %v178_v6 }
  0x99   : > { %v185_v9 = vsel %vm184_vm1, %v182_v7, 0.0  ;;  %v186_v10 = vsel %vm184_vm1, %v183_v8, 0.0 }
  0x9a   : > { %188 = vst.msk [vmem:[#allocation2] sm:$0xff] %vm187_vm2, %v185_v9 }
  0x9b   : > { %189 = vst.msk [vmem:[#allocation2 + $0x8] sm:$0xff] %vm187_vm2, %v186_v10 }
  0x9f   : > { %194 = vrot.lane.b32.xlu0 %v178_v6, %s839_s26 }
 0x109   : > { %v193_v11 = vpop.permute.xlu0 %192 }
 0x10a   : > { %198 = vst.msk [vmem:[#allocation3] sm:$0xff] %vm184_vm1, %v193_v11 }
 0x111   : > { %v195_v12 = vpop.permute.xlu0 %194 }
 0x112   : > { %199 = vst.msk [vmem:[#allocation3 + $0x8] sm:$0xff] %vm184_vm1, %v195_v12 }
 0x113 PF: > { %v209_v13 = vld [vmem:[#allocation6 + $0x48] sm:$0xff]  ;;  %v208_v14 = vld [vmem:[#allocation6 + $0x40] sm:$0xff]  ;;  %v245_v15 = vlaneseq  ;;  %v207_v16 = vld [vmem:[#allocation6 + $0x38] sm:$0xff]  ;;  %v281_v23 = vperm.slane %v898_v0, 1  ;;  %v244_v24 = vperm.slane %v898_v0, 0  ;;  %vm210_vm3 = vcmask 523264  }
 0x114   : > { %225 = vmatpush.msra.mxu0 %v209_v13  ;;  %713 = vmatpush.msra.mxu3 %v209_v13  ;;  %v206_v18 = vld [vmem:[#allocation6 + $0x30] sm:$0xff]  ;;  %v205_v20 = vld [vmem:[#allocation6 + $0x28] sm:$0xff]  ;;  %v204_v21 = vld [vmem:[#allocation6 + $0x20] sm:$0xff]  ;;  %v317_v28 = vperm.slane %v898_v0, 2  ;;  %v389_v29 = vperm.slane %v898_v0, 4  ;;  %v353_v30 = vperm.slane %v898_v0, 3 }
 0x115   : > { %v246_v17 = vshrl.u32 %v245_v15, 7  ;;  %v203_v22 = vld [vmem:[#allocation6 + $0x18] sm:$0xff]  ;;  %v202_v25 = vld [vmem:[#allocation6 + $0x10] sm:$0xff]  ;;  %v251_v31 = vperm.slane %v900_v1, 0  ;;  %v324_v32 = vperm.slane %v900_v1, 2  ;;  %v288_v33 = vperm.slane %v900_v1, 1 }
 0x116   : > { %226 = vmatpush.msra.mxu0 %v208_v14  ;;  %714 = vmatpush.msra.mxu3 %v208_v14  ;;  %v911_v26 = vld [vmem:[#allocation2] sm:$0xff]  ;;  %v913_v27 = vld [vmem:[#allocation2 + $0x8] sm:$0xff]  ;;  %v425_v34 = vperm.slane %v898_v0, 5  ;;  %v497_v35 = vperm.slane %v898_v0, 7  ;;  %v461_v36 = vperm.slane %v898_v0, 6  ;;  %v360_v37 = vperm.slane %v900_v1, 3 }
 0x117   : > { %v247_v19 = vadd.s32 8, %v246_v17  ;;  %v468_v38 = vperm.slane %v900_v1, 6  ;;  %v396_v39 = vperm.slane %v900_v1, 4  ;;  %v432_v40 = vperm.slane %v900_v1, 5  ;;  %s840_s27 = smov 96   ;;  %v536_v11 = vld [vmem:[#allocation6 + $0x68] sm:$0xff] }
 0x118   : > { %227 = vmatpush.msra.mxu0 %v207_v16  ;;  %715 = vmatpush.msra.mxu3 %v207_v16  ;;  %v504_v58 = vperm.slane %v900_v1, 7  ;;  %v535_v14 = vld [vmem:[#allocation6 + $0x60] sm:$0xff]  ;;  %v534_v15 = vld [vmem:[#allocation6 + $0x58] sm:$0xff]  ;;  %v992_v17 = vperm.slane %v902_v2, 1  ;;  %vm537_vm4 = vcmask 261120   ;;  %s841_s28 = smov 64  }
 0x119   : > { %757 = vset.pattern.permute.xlu1 %v247_v19  ;;  %756 = vset.pattern.permute.xlu0 %v247_v19  ;;  %v240_v16 = vld [vmem:[#allocation3] sm:$0xff]  ;;  %s842_s29 = smov 32   ;;  %vm651_vm5 = vcmask 64512  }
 0x11a   : > { %228 = vmatpush.msra.mxu0 %v206_v18  ;;  %716 = vmatpush.msra.mxu3 %v206_v18  ;;  %v533_v18 = vld [vmem:[#allocation6 + $0x50] sm:$0xff] }
 0x11b   : > { %758 = vset.pattern.permute.xlu2 %v247_v19  ;;  %556 = vmatpush.msra.mxu1 %v536_v11 }
 0x11c   : > { %229 = vmatpush.msra.mxu0 %v205_v20  ;;  %717 = vmatpush.msra.mxu3 %v205_v20 }
 0x11d   : > { %557 = vmatpush.msra.mxu1 %v535_v14 }
 0x11e   : > { %230 = vmatpush.msra.mxu0 %v204_v21  ;;  %718 = vmatpush.msra.mxu3 %v204_v21 }
 0x11f   : > { %558 = vmatpush.msra.mxu1 %v534_v15 }
 0x120   : > { %231 = vmatpush.msra.mxu0 %v203_v22  ;;  %719 = vmatpush.msra.mxu3 %v203_v22 }
 0x121   : > { %286 = vperm.xlu1 %757, %v281_v23   ;;  %249 = vperm.xlu0 %756, %v244_v24  }
 0x122   : > { %232 = vmatpush.msra.mxu0 %v202_v25  ;;  %720 = vmatpush.msra.mxu3 %v202_v25 }
 0x123   : > { %704 = vmatmul.msk.f32.vlgmr.msra.gmra.mxu0 %vm210_vm3, %v911_v26  ;;  %705 = vmatmul.msk.f32.vlgmr.msra.gmra.mxu3 %vm210_vm3, %v913_v27 }
 0x124   : > { %322 = vperm.xlu2 %758, %v317_v28   ;;  %559 = vmatpush.msra.mxu1 %v533_v18 }
 0x129   : > { %394 = vperm.xlu1 %757, %v389_v29   ;;  %358 = vperm.xlu0 %756, %v353_v30  }
 0x12c   : > { %256 = vperm.xlu2 %758, %v251_v31  }
 0x131   : > { %329 = vperm.xlu1 %757, %v324_v32   ;;  %293 = vperm.xlu0 %756, %v288_v33  }
 0x134   : > { %430 = vperm.xlu2 %758, %v425_v34  }
 0x139   : > { %502 = vperm.xlu1 %757, %v497_v35   ;;  %466 = vperm.xlu0 %756, %v461_v36  }
 0x13c   : > { %365 = vperm.xlu2 %758, %v360_v37  }
 0x141   : > { %473 = vperm.xlu1 %757, %v468_v38   ;;  %401 = vperm.xlu0 %756, %v396_v39  }
 0x144   : > { %437 = vperm.xlu2 %758, %v432_v40  }
 0x17e   : > { %v323_v60 = vpop.permute.xlu2 %322 }
 0x17f   : > { %v343_v30 = vmul.f32 %v323_v60, %v992_v17 }
 0x186   : > { %v969_v61 = vpop.permute.xlu2 %256 }
 0x18e   : > { %v971_v0 = vpop.permute.xlu2 %430 }
 0x193   : > { %v287_v62 = vpop.permute.xlu1 %286  ;;  %v250_v63 = vpop.permute.xlu0 %249 }
 0x194   : > { %v307_v22 = vmul.f32 %v287_v62, %v992_v17  ;;  %v271_v28 = vmul.f32 %v992_v17, %v250_v63 }
 0x196   : > { %v975_v5 = vpop.permute.xlu2 %365 }
 0x19b   : > { %v973_v3 = vpop.permute.xlu1 %394  ;;  %v359_v4 = vpop.permute.xlu0 %358 }
 0x19c   : > { %v415_v35 = vmul.f32 %v973_v3, %v992_v17 }
 0x19e   : > { %v981_v7 = vpop.permute.xlu2 %437 }
 0x1a0   : > { %v932_v41 = vpop.f32.mrf.mxu0 }
 0x1a1   : > { %v331_v42 = vperm.slane %v932_v41, 2  ;;  %v295_v43 = vperm.slane %v932_v41, 1  ;;  %v258_v44 = vperm.slane %v932_v41, 0  ;;  %v403_v45 = vperm.slane %v932_v41, 4 }
 0x1a2   : > { %v367_v46 = vperm.slane %v932_v41, 3  ;;  %v439_v47 = vperm.slane %v932_v41, 5  ;;  %v511_v50 = vperm.slane %v932_v41, 7  ;;  %v475_v51 = vperm.slane %v932_v41, 6 }
 0x1a3   : > { %335 = vrot.lane.b32.xlu2 %v331_v42, %s840_s27  ;;  %299 = vrot.lane.b32.xlu1 %v295_v43, %s840_s27  ;;  %v977_v6 = vpop.permute.xlu1 %329  ;;  %v979_v1 = vpop.permute.xlu0 %293  ;;  %v242_v20 = vadd.f32 %v240_v16, %v932_v41  ;;  %v379_v43 = vmul.f32 %v359_v4, %v992_v17 }
 0x1a4   : > { %262 = vrot.lane.b32.xlu0 %v258_v44, %s840_s27 }
 0x1a6   : > { %v946_v48 = vpop.f32.mrf.mxu3 }
 0x1a7   : > { %v259_v49 = vperm.slane %v946_v48, 0  ;;  %v332_v52 = vperm.slane %v946_v48, 2  ;;  %v296_v53 = vperm.slane %v946_v48, 1  ;;  %v368_v54 = vperm.slane %v946_v48, 3 }
 0x1a8   : > { %v476_v55 = vperm.slane %v946_v48, 6  ;;  %v404_v56 = vperm.slane %v946_v48, 4  ;;  %v440_v57 = vperm.slane %v946_v48, 5  ;;  %v512_v59 = vperm.slane %v946_v48, 7 }
 0x1ab   : > { %407 = vrot.lane.b32.xlu2 %v403_v45, %s840_s27  ;;  %371 = vrot.lane.b32.xlu1 %v367_v46, %s840_s27  ;;  %v983_v8 = vpop.permute.xlu1 %502  ;;  %v985_v9 = vpop.permute.xlu0 %466 }
 0x1ac   : > { %443 = vrot.lane.b32.xlu0 %v439_v47, %s840_s27  ;;  %v487_v14 = vmul.f32 %v985_v9, %v992_v17 }
 0x1b3   : > { %515 = vrot.lane.b32.xlu2 %v511_v50, %s840_s27  ;;  %479 = vrot.lane.b32.xlu1 %v475_v51, %s840_s27  ;;  %v987_v12 = vpop.permute.xlu1 %473  ;;  %v989_v13 = vpop.permute.xlu0 %401  ;;  %v451_v51 = vmul.f32 %v971_v0, %v992_v17 }
 0x1b4   : > { %264 = vrot.lane.b32.xlu0 %v259_v49, %s840_s27 }
 0x1bb   : > { %337 = vrot.lane.b32.xlu2 %v332_v52, %s840_s27  ;;  %301 = vrot.lane.b32.xlu1 %v296_v53, %s840_s27 }
 0x1bc   : > { %373 = vrot.lane.b32.xlu0 %v368_v54, %s840_s27 }
 0x1c3   : > { %481 = vrot.lane.b32.xlu2 %v476_v55, %s840_s27  ;;  %409 = vrot.lane.b32.xlu1 %v404_v56, %s840_s27  ;;  %v241_v55 = vld [vmem:[#allocation3 + $0x8] sm:$0xff] }
 0x1c4   : > { %445 = vrot.lane.b32.xlu0 %v440_v57, %s840_s27 }
 0x1cb   : > { %517 = vrot.lane.b32.xlu1 %v512_v59, %s840_s27 }
 0x1cc   : > { %509 = vperm.xlu0 %756, %v504_v58  }
 0x1fd   : > { %v336_v10 = vpop.permute.xlu2 %335 }
 0x1fe   : > { %v341_v23 = vadd.f32 %v336_v10, %v242_v20 }
 0x200   : > { %v345_v34 = vadd.f32 %v343_v30, %v341_v23  ;;  %v272_v23 = vmul.f32 %v992_v17, %v969_v61 }
 0x202   : > { %v347_v44 = vmax.f32 %v345_v34, 0.0 }
 0x204   : > { %v349_v56 = vmul.f32 %v347_v44, %v323_v60  ;;  %v380_v44 = vmul.f32 %v975_v5, %v992_v17 }
 0x205   : > { %v408_v19 = vpop.permute.xlu2 %407 }
 0x206   : > { %v413_v32 = vadd.f32 %v408_v19, %v242_v20 }
 0x208   : > { %v417_v38 = vadd.f32 %v415_v35, %v413_v32 }
 0x20a   : > { %v419_v53 = vmax.f32 %v417_v38, 0.0 }
 0x20c   : > { %v421_v15 = vmul.f32 %v419_v53, %v973_v3  ;;  %v416_v53 = vmul.f32 %v989_v13, %v992_v17 }
 0x20d   : > { %v516_v39 = vpop.permute.xlu2 %515 }
 0x20e   : > { %v521_v57 = vadd.f32 %v516_v39, %v242_v20 }
 0x215   : > { %v300_v21 = vpop.permute.xlu1 %299 }
 0x216   : > { %v305_v24 = vadd.f32 %v300_v21, %v242_v20  ;;  %v263_v25 = vpop.permute.xlu0 %262 }
 0x217   : > { %v268_v29 = vadd.f32 %v263_v25, %v242_v20 }
 0x218   : > { %v309_v31 = vadd.f32 %v307_v22, %v305_v24  ;;  %v338_v24 = vpop.permute.xlu2 %337 }
 0x219   : > { %v273_v33 = vadd.f32 %v271_v28, %v268_v29 }
 0x21a   : > { %v311_v36 = vmax.f32 %v309_v31, 0.0 }
 0x21b   : > { %v275_v37 = vmax.f32 %v273_v33, 0.0  ;;  %v344_v33 = vmul.f32 %v977_v6, %v992_v17 }
 0x21c   : > { %v313_v47 = vmul.f32 %v311_v36, %v287_v62  ;;  %v1006_v62 = vadd.f32 %v241_v55, %v946_v48  ;;  %v308_v36 = vmul.f32 %v979_v1, %v992_v17 }
 0x21d   : > { %v277_v40 = vmul.f32 %v275_v37, %v250_v63  ;;  %v372_v42 = vpop.permute.xlu1 %371  ;;  %v523_v63 = vmul.f32 %v983_v8, %v992_v17 }
 0x21e   : > { %v377_v45 = vadd.f32 %v372_v42, %v242_v20  ;;  %v444_v46 = vpop.permute.xlu0 %443  ;;  %v342_v31 = vadd.f32 %v338_v24, %v1006_v62 }
 0x21f   : > { %v279_v49 = vmax.f32 %v277_v40, 0.0  ;;  %v449_v50 = vadd.f32 %v444_v46, %v242_v20  ;;  %v525_v18 = vadd.f32 %v523_v63, %v521_v57 }
 0x220   : > { %v381_v52 = vadd.f32 %v379_v43, %v377_v45  ;;  %v346_v39 = vadd.f32 %v344_v33, %v342_v31 }
 0x221   : > { %v315_v54 = vmax.f32 %v279_v49, %v313_v47  ;;  %v453_v59 = vadd.f32 %v451_v51, %v449_v50  ;;  %v527_v30 = vmax.f32 %v525_v18, 0.0 }
 0x222   : > { %v383_v58 = vmax.f32 %v381_v52, 0.0  ;;  %v348_v47 = vmax.f32 %v346_v39, 0.0 }
 0x223   : > { %v351_v10 = vmax.f32 %v315_v54, %v349_v56  ;;  %v455_v60 = vmax.f32 %v453_v59, 0.0  ;;  %v529_v38 = vmul.f32 %v527_v30, %v983_v8  ;;  %v482_v8 = vpop.permute.xlu2 %481  ;;  %v452_v59 = vmul.f32 %v981_v7, %v992_v17 }
 0x224   : > { %v385_v11 = vmul.f32 %v383_v58, %v359_v4  ;;  %v350_v55 = vmul.f32 %v348_v47, %v977_v6  ;;  %v486_v63 = vadd.f32 %v482_v8, %v1006_v62 }
 0x225   : > { %v480_v16 = vpop.permute.xlu1 %479  ;;  %v457_v3 = vmul.f32 %v455_v60, %v971_v0 }
 0x226   : > { %v387_v19 = vmax.f32 %v351_v10, %v385_v11  ;;  %v485_v21 = vadd.f32 %v480_v16, %v242_v20  ;;  %v265_v22 = vpop.permute.xlu0 %264 }
 0x227   : > { %v269_v4 = vadd.f32 %v265_v22, %v1006_v62 }
 0x228   : > { %v423_v25 = vmax.f32 %v387_v19, %v421_v15  ;;  %v489_v28 = vadd.f32 %v487_v14, %v485_v21  ;;  %v488_v14 = vmul.f32 %v987_v12, %v992_v17 }
 0x229   : > { %v274_v29 = vadd.f32 %v272_v23, %v269_v4 }
 0x22a   : > { %v491_v32 = vmax.f32 %v489_v28, 0.0  ;;  %v459_v20 = vmax.f32 %v423_v25, %v457_v3  ;;  %v490_v18 = vadd.f32 %v488_v14, %v486_v63 }
 0x22b   : > { %v276_v35 = vmax.f32 %v274_v29, 0.0 }
 0x22c   : > { %v493_v34 = vmul.f32 %v491_v32, %v985_v9  ;;  %v492_v25 = vmax.f32 %v490_v18, 0.0 }
 0x22d   : > { %v302_v37 = vpop.permute.xlu1 %301  ;;  %v278_v9 = vmul.f32 %v276_v35, %v969_v61 }
 0x22e   : > { %v306_v40 = vadd.f32 %v302_v37, %v1006_v62  ;;  %v374_v42 = vpop.permute.xlu0 %373  ;;  %v495_v43 = vmax.f32 %v459_v20, %v493_v34  ;;  %v591_v37 = vld [vmem:[#allocation6 + $0x70] sm:$0xff] }
 0x22f   : > { %v378_v0 = vadd.f32 %v374_v42, %v1006_v62  ;;  %v280_v51 = vmax.f32 %v278_v9, 0.0 }
 0x230   : > { %v310_v45 = vadd.f32 %v308_v36, %v306_v40  ;;  %v531_v46 = vmax.f32 %v495_v43, %v529_v38  ;;  %v593_v36 = vld [vmem:[#allocation6 + $0x80] sm:$0xff] }
 0x231   : > { %v382_v50 = vadd.f32 %v380_v44, %v378_v0  ;;  %v636_v0 = vperm.slane %v902_v2, 2 }
 0x232   : > { %v312_v49 = vmax.f32 %v310_v45, 0.0  ;;  %706 = vmatmul.msk.f32.vlgmr.msra.gmra.mxu1 %vm537_vm4, %v531_v46 }
 0x233   : > { %v384_v57 = vmax.f32 %v382_v50, 0.0 }
 0x234   : > { %v314_v52 = vmul.f32 %v312_v49, %v979_v1 }
 0x235   : > { %v410_v54 = vpop.permute.xlu1 %409  ;;  %v386_v6 = vmul.f32 %v384_v57, %v975_v5  ;;  %v494_v5 = vmul.f32 %v492_v25, %v987_v12  ;;  %v592_v12 = vld [vmem:[#allocation6 + $0x78] sm:$0xff] }
 0x236   : > { %v316_v56 = vmax.f32 %v280_v51, %v314_v52  ;;  %v414_v61 = vadd.f32 %v410_v54, %v1006_v62  ;;  %v446_v58 = vpop.permute.xlu0 %445 }
 0x237   : > { %v450_v10 = vadd.f32 %v446_v58, %v1006_v62 }
 0x238   : > { %v352_v11 = vmax.f32 %v316_v56, %v350_v55  ;;  %v418_v1 = vadd.f32 %v416_v53, %v414_v61 }
 0x239   : > { %v454_v15 = vadd.f32 %v452_v59, %v450_v10 }
 0x23a   : > { %v420_v16 = vmax.f32 %v418_v1, 0.0  ;;  %v388_v60 = vmax.f32 %v352_v11, %v386_v6 }
 0x23b   : > { %v456_v19 = vmax.f32 %v454_v15, 0.0 }
 0x23c   : > { %v422_v21 = vmul.f32 %v420_v16, %v989_v13 }
 0x23d   : > { %v518_v22 = vpop.permute.xlu1 %517  ;;  %v458_v28 = vmul.f32 %v456_v19, %v981_v7 }
 0x23e   : > { %v424_v23 = vmax.f32 %v388_v60, %v422_v21  ;;  %v522_v24 = vadd.f32 %v518_v22, %v1006_v62  ;;  %v510_v4 = vpop.permute.xlu0 %509 }
 0x23f   : > { %v524_v29 = vmul.f32 %v510_v4, %v992_v17  ;;  %v594_v17 = vld [vmem:[#allocation6 + $0x88] sm:$0xff] }
 0x240   : > { %v460_v30 = vmax.f32 %v424_v23, %v458_v28  ;;  %615 = vmatpush.msra.mxu2 %v594_v17 }
 0x241   : > { %v526_v31 = vadd.f32 %v524_v29, %v522_v24 }
 0x242   : > { %v496_v32 = vmax.f32 %v460_v30, %v494_v5  ;;  %616 = vmatpush.msra.mxu2 %v593_v36 }
 0x243   : > { %v528_v3 = vmax.f32 %v526_v31, 0.0 }
 0x244   : > { %617 = vmatpush.msra.mxu2 %v592_v12 }
 0x245   : > { %v530_v33 = vmul.f32 %v528_v3, %v510_v4 }
 0x246   : > { %618 = vmatpush.msra.mxu2 %v591_v37 }
 0x247   : > { %v532_v20 = vmax.f32 %v496_v32, %v530_v33 }
 0x249   : > { %707 = vmatmul.msk.f32.gmra.mxu1 %vm537_vm4, %v532_v20 }
 0x2af   : > { %v561_v13 = vpop.f32.mrf.mxu1 }
 0x2b0   : > { %569 = vrot.lane.b32.xlu2 %v561_v13, %s841_s28 }
 0x2c6   : > { %v564_v62 = vpop.f32.mrf.mxu1 }
 0x2c7   : > { %571 = vrot.lane.b32.xlu0 %v564_v62, %s841_s28 }
 0x30a   : > { %v570_v34 = vpop.permute.xlu2 %569 }
 0x30b   : > { %v575_v7 = vadd.f32 %v570_v34, %v932_v41 }
 0x30d   : > { %v577_v35 = vmax.f32 %v575_v7, 0.0 }
 0x30f   : > { %595 = vrot.lane.b32.xlu1 %v577_v35, %s841_s28 }
 0x339   : > { %v572_v38 = vpop.permute.xlu0 %571 }
 0x33a   : > { %v576_v39 = vadd.f32 %v572_v38, %v946_v48 }
 0x33c   : > { %v578_v40 = vmax.f32 %v576_v39, 0.0 }
 0x33e   : > { %597 = vrot.lane.b32.xlu2 %v578_v40, %s841_s28 }
 0x346   : > { %638 = vrot.lane.b32.xlu2 %v636_v0, %s840_s27 }
 0x381   : > { %v596_v42 = vpop.permute.xlu1 %595 }
 0x382   : > { %708 = vmatmul.msk.f32.vlgmr.msra.gmra.mxu2 %vm537_vm4, %v596_v42 }
 0x398   : > { %v598_v43 = vpop.permute.xlu2 %597 }
 0x399   : > { %709 = vmatmul.msk.f32.gmra.mxu2 %vm537_vm4, %v598_v43 }
 0x3a0   : > { %v639_v46 = vpop.permute.xlu2 %638 }
 0x405   : > { %v620_v44 = vpop.f32.mrf.mxu2 }
 0x406   : > { %628 = vrot.lane.b32.xlu0 %v620_v44, %s840_s27 }
 0x40e   : > { %581 = vrot.lane.b32.xlu0 %v577_v35, %s840_s27 }
 0x41c   : > { %v623_v9 = vpop.f32.mrf.mxu2 }
 0x41d   : > { %630 = vrot.lane.b32.xlu1 %v623_v9, %s840_s27 }
 0x425   : > { %583 = vrot.lane.b32.xlu1 %v578_v40, %s840_s27 }
 0x478   : > { %v629_v45 = vpop.permute.xlu0 %628 }
 0x479   : > { %v634_v47 = vadd.f32 %v629_v45, %v932_v41 }
 0x47b   : > { %v641_v49 = vadd.f32 %v639_v46, %v634_v47 }
 0x47d   : > { %645 = vrot.lane.b32.xlu2 %v641_v49, %s842_s29 }
 0x480   : > { %v582_v2 = vpop.permute.xlu0 %581 }
 0x481   : > { %v587_v50 = vsel %vm537_vm4, %v911_v26, %v582_v2 }
 0x482   : > { %589 = vst.msk [vmem:[#allocation2] sm:$0xff] %vm210_vm3, %v587_v50 }
 0x48f   : > { %v631_v8 = vpop.permute.xlu1 %630 }
 0x490   : > { %v635_v51 = vadd.f32 %v631_v8, %v946_v48 }
 0x492   : > { %v642_v52 = vadd.f32 %v639_v46, %v635_v51 }
 0x494   : > { %647 = vrot.lane.b32.xlu0 %v642_v52, %s842_s29 }
 0x497   : > { %v584_v53 = vpop.permute.xlu1 %583 }
 0x498   : > { %v588_v54 = vsel %vm537_vm4, %v913_v27, %v584_v53 }
 0x499   : > { %590 = vst.msk [vmem:[#allocation2 + $0x8] sm:$0xff] %vm210_vm3, %v588_v54 }
 0x4d7   : > { %v646_v41 = vpop.permute.xlu2 %645 }
 0x4d8   : > { %v652_v55 = vsel %vm651_vm5, %v646_v41, 0.0 }
 0x4d9   : > { %654 = vst [vmem:[%s1075_s2] sm:$0xff] %v652_v55 }
 0x506   : > { %v648_v26 = vpop.permute.xlu0 %647 }
 0x507   : > { %v653_v56 = vsel %vm651_vm5, %v648_v26, 0.0 }
 0x508   : > { %655 = vst [vmem:[%s1075_s2 + $0x8] sm:$0xff] %v653_v56 }
 0x509 PF: > { %s14_s9 = sadd.s32 1, %s833_s9  }
 0x50a   : > { %p11_p7 = scmp.ge.s32.totalorder %s14_s9, 6  }
 0x50c   :  { %13 = sbr.rel (!%p11_p7) target bundleno = 2 (0x2), region = 64 }
 0x511   :  { %667 = vsyncpa [#allocation5], 1 }
 0x512   :  { %669 = vsyncpa [#allocation5 + $0x1], 1 }
 0x513   :  { %670 = vsyncpa [#allocation7], 1 }

</bundles_post_ra>
